<compile_context>
chip_gen: v6e
topology: v6e:2x2x1
jax: 0.10.0
libtpu: 0.0.40
codegen_flags: <defaults>
</compile_context>

<pallas_src>
import functools
import math

import jax
import jax.numpy as jnp
from jax.experimental import pallas as pl
from jax.experimental.pallas import tpu as pltpu


# ------------------------------------------------------------------ helpers ---

def _round_up(x, m):
    return ((x + m - 1) // m) * m


# Generation-aware matmul tile sizes (v5e: 4x128x128 MXU -> 128; v6e/v7x: 256x256 MXU -> 256).
try:
    _KIND = jax.devices()[0].device_kind.lower()
except Exception:  # pragma: no cover
    _KIND = ""
_IS_V5E = ("v5 lite" in _KIND) or ("v5e" in _KIND) or ("v5litepod" in _KIND)
_TILE_M, _TILE_N, _TILE_K = (128, 128, 512) if _IS_V5E else (256, 256, 512)


# ------------------------------------------------------------------ kernels ---

def _matmul_kernel(x_ref, w_ref, b_ref, o_ref, acc_ref, *, activation):
    # x: (tm, tk) bf16, w: (tk, tn) bf16, b: (1, tn) f32, acc: (tm, tn) f32
    @pl.when(pl.program_id(2) == 0)
    def _():
        acc_ref[...] = jnp.zeros_like(acc_ref)

    acc_ref[...] += jnp.dot(x_ref[...], w_ref[...], preferred_element_type=jnp.float32)

    @pl.when(pl.program_id(2) == pl.num_programs(2) - 1)
    def _():
        y = acc_ref[...] + b_ref[...]
        if activation == "relu":
            y = jnp.maximum(y, 0.0)
        o_ref[...] = y.astype(o_ref.dtype)


def _mha_kernel(q_ref, k_ref, v_ref, m_ref, o_ref, *, scale):
    # Per batch element: q (H, Sq, hd) bf16, k/v (H, Sk, hd) bf16, mask (Sq, Sk) f32 (shared by heads).
    q = q_ref[0]
    k = k_ref[0]
    v = v_ref[0]
    mask = m_ref[0]
    # Contract head_dim directly (no materialized k.T transpose).
    s = jnp.einsum("hqd,hkd->hqk", q, k, preferred_element_type=jnp.float32) * scale
    s = s - jnp.max(s, axis=-1, keepdims=True)
    e = jnp.exp(s)
    p = e * pl.reciprocal(jnp.sum(e, axis=-1, keepdims=True), approx=True)
    # NOTE: the reference module applies masked_fill AFTER softmax with value 1e-9.
    p = jnp.where(mask[None] == 0.0, jnp.float32(1e-9), p)
    ctx = jnp.einsum("hqk,hkd->hqd", p.astype(jnp.bfloat16), v,
                     preferred_element_type=jnp.float32)
    o_ref[0] = ctx.astype(o_ref.dtype)


def _add_ln_kernel(x_ref, r_ref, g_ref, b_ref, o_ref, *, eps):
    # LayerNorm(x + residual), computed in f32.
    x = x_ref[...].astype(jnp.float32) + r_ref[...].astype(jnp.float32)
    mu = jnp.mean(x, axis=-1, keepdims=True)
    xc = x - mu
    var = jnp.mean(xc * xc, axis=-1, keepdims=True)
    o_ref[...] = (xc * jax.lax.rsqrt(var + eps) * g_ref[...] + b_ref[...]).astype(o_ref.dtype)


def _ffn_kernel(x_ref, w1_ref, b1_ref, w2_ref, b2_ref, o_ref):
    # out = relu(x @ W1 + b1) @ W2 + b2 + x   (dropout == identity, eval mode)
    x = x_ref[...]
    xb = x.astype(jnp.bfloat16)
    h = jnp.dot(xb, w1_ref[...], preferred_element_type=jnp.float32) + b1_ref[...]
    h = jnp.maximum(h, 0.0).astype(jnp.bfloat16)
    y = jnp.dot(h, w2_ref[...], preferred_element_type=jnp.float32) + b2_ref[...]
    o_ref[...] = (y + x).astype(o_ref.dtype)


# ---------------------------------------------------------------- wrappers ---

def linear(x2d, w, b, activation=None, out_dtype=jnp.float32):
    """Tiled y = act(x @ w + b). x:(M,Din) any float dtype, w:(Din,Dout) f32, b:(1,Dout) f32."""
    M, Din = x2d.shape
    Dout = w.shape[1]

    tm = min(_TILE_M, _round_up(M, 8))
    tn = min(_TILE_N, _round_up(Dout, 128))
    tk = min(_TILE_K, _round_up(Din, 128))
    Mp, Kp, Np = _round_up(M, tm), _round_up(Din, tk), _round_up(Dout, tn)

    xb = x2d.astype(jnp.bfloat16)
    wb = w.astype(jnp.bfloat16)
    if (Mp, Kp) != (M, Din):
        xb = jnp.pad(xb, ((0, Mp - M), (0, Kp - Din)))
    if (Kp, Np) != (Din, Dout):
        wb = jnp.pad(wb, ((0, Kp - Din), (0, Np - Dout)))
    bp = b if Np == Dout else jnp.pad(b, ((0, 0), (0, Np - Dout)))

    out = pl.pallas_call(
        functools.partial(_matmul_kernel, activation=activation),
        out_shape=jax.ShapeDtypeStruct((Mp, Np), out_dtype),
        grid=(Mp // tm, Np // tn, Kp // tk),
        in_specs=[
            pl.BlockSpec((tm, tk), lambda i, j, k: (i, k)),
            pl.BlockSpec((tk, tn), lambda i, j, k: (k, j)),
            pl.BlockSpec((1, tn), lambda i, j, k: (0, j)),
        ],
        out_specs=pl.BlockSpec((tm, tn), lambda i, j, k: (i, j)),
        scratch_shapes=[pltpu.VMEM((tm, tn), jnp.float32)],
        compiler_params=pltpu.CompilerParams(
            dimension_semantics=("parallel", "parallel", "arbitrary")),
        cost_estimate=pl.CostEstimate(
            flops=2 * Mp * Np * Kp,
            transcendentals=0,
            bytes_accessed=Mp * Kp * 2 + Kp * Np * 2 + Np * 4
            + Mp * Np * jnp.dtype(out_dtype).itemsize),
    )(xb, wb, bp)

    if (Mp, Np) != (M, Dout):
        out = out[:M, :Dout]
    return out


def add_layer_norm(x, res, g, b, eps=1e-5):
    """LayerNorm(x + res), row-tiled.  x may be bf16 (attention output); res is f32."""
    B, S, D = res.shape
    M = B * S
    x2 = x.reshape(M, D)
    r2 = res.reshape(M, D)

    tm = min(512, _round_up(M, 8))
    Mp = _round_up(M, tm)
    if Mp != M:
        x2 = jnp.pad(x2, ((0, Mp - M), (0, 0)))
        r2 = jnp.pad(r2, ((0, Mp - M), (0, 0)))

    out = pl.pallas_call(
        functools.partial(_add_ln_kernel, eps=eps),
        out_shape=jax.ShapeDtypeStruct((Mp, D), jnp.float32),
        grid=(Mp // tm,),
        in_specs=[
            pl.BlockSpec((tm, D), lambda i: (i, 0)),
            pl.BlockSpec((tm, D), lambda i: (i, 0)),
            pl.BlockSpec((1, D), lambda i: (0, 0)),
            pl.BlockSpec((1, D), lambda i: (0, 0)),
        ],
        out_specs=pl.BlockSpec((tm, D), lambda i: (i, 0)),
        compiler_params=pltpu.CompilerParams(dimension_semantics=("parallel",)),
    )(x2, r2, g, b)

    if Mp != M:
        out = out[:M]
    return out.reshape(B, S, D)


def multi_head_attention(x, mask, params, num_heads, enc_context=None):
    """Returns merged context (B, Sq, D) in bf16.  Attention-prob maps are never consumed by
    Transformer.forward, so they are not materialized (saves O(S^2) HBM writeback per layer)."""
    B, Sq, D = x.shape
    H = num_heads
    hd = D // H

    def split_heads(t):  # (B, S, D) bf16 -> (B, H, S, hd)
        Bs, S, _ = t.shape
        return t.reshape(Bs, S, H, hd).transpose(0, 2, 1, 3)

    if enc_context is None:
        # Fused QKV projection: one wide matmul instead of three.
        w_qkv = jnp.concatenate([params["w1"], params["w2"], params["w3"]], axis=1)
        b_qkv = jnp.concatenate([params["b1"], params["b2"], params["b3"]], axis=1)
        qkv = linear(x.reshape(B * Sq, D), w_qkv, b_qkv,
                     out_dtype=jnp.bfloat16).reshape(B, Sq, 3 * D)
        q = split_heads(qkv[..., :D])
        k = split_heads(qkv[..., D:2 * D])
        v = split_heads(qkv[..., 2 * D:])
        Sk = Sq
    else:
        Sk = enc_context.shape[1]
        q = split_heads(linear(x.reshape(B * Sq, D), params["w1"], params["b1"],
                               out_dtype=jnp.bfloat16).reshape(B, Sq, D))
        # Fused KV projection from the encoder context.
        w_kv = jnp.concatenate([params["w2"], params["w3"]], axis=1)
        b_kv = jnp.concatenate([params["b2"], params["b3"]], axis=1)
        kv = linear(enc_context.reshape(B * Sk, D), w_kv, b_kv,
                    out_dtype=jnp.bfloat16).reshape(B, Sk, 2 * D)
        k = split_heads(kv[..., :D])
        v = split_heads(kv[..., D:])

    ctx = pl.pallas_call(
        functools.partial(_mha_kernel, scale=1.0 / math.sqrt(D)),  # reference scales by 1/sqrt(d_dim)
        out_shape=jax.ShapeDtypeStruct((B, H, Sq, hd), jnp.bfloat16),
        grid=(B,),
        in_specs=[
            pl.BlockSpec((1, H, Sq, hd), lambda bidx: (bidx, 0, 0, 0)),
            pl.BlockSpec((1, H, Sk, hd), lambda bidx: (bidx, 0, 0, 0)),
            pl.BlockSpec((1, H, Sk, hd), lambda bidx: (bidx, 0, 0, 0)),
            pl.BlockSpec((1, Sq, Sk), lambda bidx: (bidx, 0, 0)),
        ],
        out_specs=pl.BlockSpec((1, H, Sq, hd), lambda bidx: (bidx, 0, 0, 0)),
        compiler_params=pltpu.CompilerParams(dimension_semantics=("parallel",)),
        cost_estimate=pl.CostEstimate(
            flops=4 * B * Sq * Sk * D,
            transcendentals=B * H * Sq * Sk,
            bytes_accessed=(B * H * Sq * hd + 2 * B * H * Sk * hd) * 2
            + B * Sq * Sk * 4 + B * H * Sq * hd * 2),
    )(q, k, v, mask)

    # merge heads: (B, H, Sq, hd) -> (B, Sq, D)
    return ctx.transpose(0, 2, 1, 3).reshape(B, Sq, D)


def feed_forward(x, p):
    """Fused FFN with residual: relu(x@W1+b1)@W2 + b2 + x (row-tiled; weights stay VMEM-resident)."""
    B, S, D = x.shape
    Dff = p["w1"].shape[1]
    M = B * S
    x2 = x.reshape(M, D)

    tm = min(512, _round_up(M, 8))
    Mp = _round_up(M, tm)
    if Mp != M:
        x2 = jnp.pad(x2, ((0, Mp - M), (0, 0)))

    out = pl.pallas_call(
        _ffn_kernel,
        out_shape=jax.ShapeDtypeStruct((Mp, D), jnp.float32),
        grid=(Mp // tm,),
        in_specs=[
            pl.BlockSpec((tm, D), lambda i: (i, 0)),
            pl.BlockSpec((D, Dff), lambda i: (0, 0)),
            pl.BlockSpec((1, Dff), lambda i: (0, 0)),
            pl.BlockSpec((Dff, D), lambda i: (0, 0)),
            pl.BlockSpec((1, D), lambda i: (0, 0)),
        ],
        out_specs=pl.BlockSpec((tm, D), lambda i: (i, 0)),
        compiler_params=pltpu.CompilerParams(dimension_semantics=("parallel",)),
        cost_estimate=pl.CostEstimate(
            flops=4 * Mp * D * Dff,
            transcendentals=0,
            bytes_accessed=Mp * D * 4 * 2 + D * Dff * 2 * 2 + (Dff + D) * 4),
    )(x2, p["w1"].astype(jnp.bfloat16), p["b1"],
      p["w2"].astype(jnp.bfloat16), p["b2"])

    if Mp != M:
        out = out[:M]
    return out.reshape(B, S, D)


# ----------------------------------------------------------------- layers ---

def encoder_layer(x, mask, p, num_heads):
    attn = multi_head_attention(x, mask, p["mha"], num_heads)
    x1 = add_layer_norm(attn, x, p["ln_g"], p["ln_b"])          # ln(dropout(attn) + x)
    return feed_forward(x1, p["ffn"])                            # dropout(ffn(x1)) + x1, no LN


def decoder_layer(x, dec_mask, enc_dec_mask, enc_context, p, num_heads):
    attn = multi_head_attention(x, dec_mask, p["mha_self"], num_heads)
    x1 = add_layer_norm(attn, x, p["ln_g"], p["ln_b"])
    cross = multi_head_attention(x1, enc_dec_mask, p["mha_cross"], num_heads,
                                 enc_context=enc_context)
    x2 = add_layer_norm(cross, x1, p["ln_g"], p["ln_b"])         # same LN params (shared, as in ref)
    return feed_forward(x2, p["ffn"])


# ------------------------------------------------------------ plain-JAX glue ---

def positional_encoding(num_tokens, d):
    pos = jnp.arange(num_tokens, dtype=jnp.float32)[:, None]
    div = 1000.0 ** (-(2.0 * jnp.arange(d // 2, dtype=jnp.float32)) / d)
    pe = jnp.zeros((num_tokens, d), dtype=jnp.float32)
    pe = pe.at[:, 0::2].set(jnp.sin(pos * div))
    pe = pe.at[:, 1::2].set(jnp.cos(pos * div))
    return pe


def create_padding_mask(seq, pad_id):
    # (B, S, S); identical across heads, so the head dim is dropped (kernel broadcasts over heads).
    pm = (seq != pad_id).astype(jnp.float32)[:, None, :]
    return pm * jnp.transpose(pm, (0, 2, 1))


def create_decoder_mask(seq, pad_id):
    S = seq.shape[1]
    causal = jnp.tril(jnp.ones((S, S), jnp.float32))[None]
    return causal * create_padding_mask(seq, pad_id)


def create_encoder_decoder_mask(enc_seq, dec_seq, pad_id):
    em = (enc_seq != pad_id).astype(jnp.float32)[:, None, :]     # (B,1,Ssrc)
    dm = (dec_seq != pad_id).astype(jnp.float32)[:, None, :]     # (B,1,Stgt)
    mask = em * jnp.transpose(dm, (0, 2, 1))                     # (B,Stgt,Ssrc)
    causal = jnp.tril(jnp.ones((dec_seq.shape[1], enc_seq.shape[1]), jnp.float32))[None]
    return mask * causal                                          # matches the reference (causal cross mask)


# ------------------------------------------------------------ parameter init ---

def init_linear(key, din, dout):
    k1, k2 = jax.random.split(key)
    bound = 1.0 / math.sqrt(din)
    w = jax.random.uniform(k1, (din, dout), jnp.float32, -bound, bound)
    b = jax.random.uniform(k2, (1, dout), jnp.float32, -bound, bound)
    return {"w": w, "b": b}


def init_mha(key, d):
    ks = jax.random.split(key, 3)
    p1, p2, p3 = (init_linear(k, d, d) for k in ks)
    return {"w1": p1["w"], "b1": p1["b"],
            "w2": p2["w"], "b2": p2["b"],
            "w3": p3["w"], "b3": p3["b"]}


def init_ffn(key, d, dff):
    k1, k2 = jax.random.split(key)
    p1 = init_linear(k1, d, dff)
    p2 = init_linear(k2, dff, d)
    return {"w1": p1["w"], "b1": p1["b"], "w2": p2["w"], "b2": p2["b"]}


def init_encoder_layer(key, d, dff):
    k1, k2 = jax.random.split(key)
    return {"mha": init_mha(k1, d), "ffn": init_ffn(k2, d, dff),
            "ln_g": jnp.ones((1, d), jnp.float32), "ln_b": jnp.zeros((1, d), jnp.float32)}


def init_decoder_layer(key, d, dff):
    k1, k2, k3 = jax.random.split(key, 3)
    return {"mha_self": init_mha(k1, d), "mha_cross": init_mha(k2, d),
            "ffn": init_ffn(k3, d, dff),
            "ln_g": jnp.ones((1, d), jnp.float32), "ln_b": jnp.zeros((1, d), jnp.float32)}


def init_transformer(key, vocab_src, vocab_trgt, d, dff, layers):
    keys = jax.random.split(key, 2 * layers + 3)
    return {
        "emb_src": 0.02 * jax.random.normal(keys[0], (vocab_src, d), jnp.float32),
        "emb_trgt": 0.02 * jax.random.normal(keys[1], (vocab_trgt, d), jnp.float32),
        "enc": [init_encoder_layer(keys[2 + i], d, dff) for i in range(layers)],
        "dec": [init_decoder_layer(keys[2 + layers + i], d, dff) for i in range(layers)],
        "out": init_linear(keys[-1], d, vocab_trgt),
    }


# ---------------------------------------------------------------- full model ---

def transformer_forward(params, x_tokens, y_tokens, num_heads, pad_token_id=0):
    d = params["emb_src"].shape[1]
    B, S_src = x_tokens.shape
    _, S_tgt = y_tokens.shape

    src = jnp.take(params["emb_src"], x_tokens, axis=0) + positional_encoding(S_src, d)[None]
    tgt = jnp.take(params["emb_trgt"], y_tokens, axis=0) + positional_encoding(S_tgt, d)[None]

    enc_mask = create_padding_mask(x_tokens, pad_token_id)
    dec_mask = create_decoder_mask(y_tokens, pad_token_id)
    enc_dec_mask = create_encoder_decoder_mask(x_tokens, y_tokens, pad_token_id)

    for p in params["enc"]:
        src = encoder_layer(src, enc_mask, p, num_heads)
    for p in params["dec"]:
        tgt = decoder_layer(tgt, dec_mask, enc_dec_mask, src, p, num_heads)

    # Final vocab projection: tiled over the vocab (N) dimension by the tiled linear.
    out = linear(tgt.reshape(B * S_tgt, d), params["out"]["w"], params["out"]["b"])
    return out.reshape(B, S_tgt, -1)


# --------------------------------------------------------------------- main ---

if __name__ == "__main__":
    # Small, shape-consistent configuration (inner_states divisible by num_heads).
    B, S_SRC, S_TGT = 2, 8, 8
    NUM_HEADS, D_MODEL, D_FF, LAYERS = 2, 32, 64, 2
    VOCAB_SRC, VOCAB_TRGT = 11, 13
    PAD_ID = 0

    key = jax.random.PRNGKey(0)
    kp, kx, ky = jax.random.split(key, 3)

    params = init_transformer(kp, VOCAB_SRC, VOCAB_TRGT, D_MODEL, D_FF, LAYERS)
    x_tokens = jax.random.randint(kx, (B, S_SRC), 0, VOCAB_SRC, dtype=jnp.int32)
    y_tokens = jax.random.randint(ky, (B, S_TGT), 0, VOCAB_TRGT, dtype=jnp.int32)

    fwd = jax.jit(functools.partial(transformer_forward,
                                    num_heads=NUM_HEADS, pad_token_id=PAD_ID))
    out = jax.block_until_ready(fwd(params, x_tokens, y_tokens))

    assert out.shape == (B, S_TGT, VOCAB_TRGT)
    assert bool(jnp.all(jnp.isfinite(out)))
    print("KERNEL_OK")
</pallas_src>

<mosaic_0001>
module attributes {stable_mosaic.version = 11 : i64} {
  func.func @_matmul_kernel(%arg0: i32, %arg1: i32, %arg2: i32, %arg3: memref<16x128xbf16, #tpu.memory_space<vmem>>, %arg4: memref<128x128xbf16, #tpu.memory_space<vmem>>, %arg5: memref<1x128xf32, #tpu.memory_space<vmem>>, %arg6: memref<16x128xbf16, #tpu.memory_space<vmem>>, %arg7: memref<16x128xf32, #tpu.memory_space<vmem>>) attributes {dimension_semantics = [#tpu.dimension_semantics<parallel>, #tpu.dimension_semantics<parallel>, #tpu.dimension_semantics<arbitrary>], iteration_bounds = array<i64: 1, 1, 1>, scalar_prefetch = 0 : i64, scratch_operands = 1 : i64, tpu.core_type = #tpu.core_type<tc>, window_params = [{transform_indices = @transform_0, window_bounds = array<i64: 16, 128>}, {transform_indices = @transform_1, window_bounds = array<i64: 128, 128>}, {transform_indices = @transform_2, window_bounds = array<i64: 1, 128>}, {transform_indices = @transform_3, window_bounds = array<i64: 16, 128>}]} {
    %c0_i32 = arith.constant 0 : i32
    %0 = arith.cmpi eq, %arg2, %c0_i32 : i32
    %1 = arith.extui %0 : i1 to i32
    %c0_i32_0 = arith.constant 0 : i32
    %2 = arith.cmpi ne, %1, %c0_i32_0 : i32
    scf.if %2 {
      %cst_10 = arith.constant 0.000000e+00 : f32
      %12 = vector.broadcast %cst_10 : f32 to vector<16x128xf32>
      %c0_11 = arith.constant 0 : index
      %c0_12 = arith.constant 0 : index
      %13 = vector.load %arg7[%c0_11, %c0_12] : memref<16x128xf32, #tpu.memory_space<vmem>>, vector<16x128xf32>
      tpu.vector_store %arg7[%c0_11, %c0_12], %12 {strides = array<i32>} : memref<16x128xf32, #tpu.memory_space<vmem>>, vector<16x128xf32>,
    } else {
    }
    %c0 = arith.constant 0 : index
    %c0_1 = arith.constant 0 : index
    %3 = vector.load %arg7[%c0, %c0_1] : memref<16x128xf32, #tpu.memory_space<vmem>>, vector<16x128xf32>
    %c0_2 = arith.constant 0 : index
    %c0_3 = arith.constant 0 : index
    %4 = vector.load %arg3[%c0_2, %c0_3] : memref<16x128xbf16, #tpu.memory_space<vmem>>, vector<16x128xbf16>
    %c0_4 = arith.constant 0 : index
    %c0_5 = arith.constant 0 : index
    %5 = vector.load %arg4[%c0_4, %c0_5] : memref<128x128xbf16, #tpu.memory_space<vmem>>, vector<128x128xbf16>
    %cst = arith.constant dense<0.000000e+00> : vector<16x128xf32>
    %6 = tpu.matmul %4, %5, %cst {dimension_numbers = #tpu.dot_dimension_numbers<[1], [0], [0], [1], [0, 0, 1, 1], [], []>} : vector<16x128xbf16>, vector<128x128xbf16>, vector<16x128xf32> -> vector<16x128xf32>
    %7 = arith.addf %3, %6 : vector<16x128xf32>
    %c0_6 = arith.constant 0 : index
    %c0_7 = arith.constant 0 : index
    %8 = vector.load %arg7[%c0_6, %c0_7] : memref<16x128xf32, #tpu.memory_space<vmem>>, vector<16x128xf32>
    tpu.vector_store %arg7[%c0_6, %c0_7], %7 {strides = array<i32>} : memref<16x128xf32, #tpu.memory_space<vmem>>, vector<16x128xf32>,
    %c0_i32_8 = arith.constant 0 : i32
    %9 = arith.cmpi eq, %arg2, %c0_i32_8 : i32
    %10 = arith.extui %9 : i1 to i32
    %c0_i32_9 = arith.constant 0 : i32
    %11 = arith.cmpi ne, %10, %c0_i32_9 : i32
    scf.if %11 {
      %c0_10 = arith.constant 0 : index
      %c0_11 = arith.constant 0 : index
      %12 = vector.load %arg7[%c0_10, %c0_11] : memref<16x128xf32, #tpu.memory_space<vmem>>, vector<16x128xf32>
      %c0_12 = arith.constant 0 : index
      %c0_13 = arith.constant 0 : index
      %13 = vector.load %arg5[%c0_12, %c0_13] : memref<1x128xf32, #tpu.memory_space<vmem>>, vector<1x128xf32>
      %14 = vector.broadcast %13 : vector<1x128xf32> to vector<16x128xf32>
      %15 = arith.addf %12, %14 : vector<16x128xf32>
      %16 = arith.truncf %15 : vector<16x128xf32> to vector<16x128xbf16>
      %c0_14 = arith.constant 0 : index
      %c0_15 = arith.constant 0 : index
      %17 = vector.load %arg6[%c0_14, %c0_15] : memref<16x128xbf16, #tpu.memory_space<vmem>>, vector<16x128xbf16>
      tpu.vector_store %arg6[%c0_14, %c0_15], %16 {strides = array<i32>} : memref<16x128xbf16, #tpu.memory_space<vmem>>, vector<16x128xbf16>,
    } else {
    }
    return
  }
  func.func @transform_0(%arg0: i32, %arg1: i32, %arg2: i32) -> (i32, i32) {
    %c0_i32 = arith.constant 0 : i32
    return %arg0, %arg2 : i32, i32
  }
  func.func @transform_1(%arg0: i32, %arg1: i32, %arg2: i32) -> (i32, i32) {
    %c0_i32 = arith.constant 0 : i32
    return %arg2, %arg1 : i32, i32
  }
  func.func @transform_2(%arg0: i32, %arg1: i32, %arg2: i32) -> (i32, i32) {
    %c0_i32 = arith.constant 0 : i32
    %c0_i32_0 = arith.constant 0 : i32
    return %c0_i32, %arg1 : i32, i32
  }
  func.func @transform_3(%arg0: i32, %arg1: i32, %arg2: i32) -> (i32, i32) {
    %c0_i32 = arith.constant 0 : i32
    return %arg0, %arg1 : i32, i32
  }
}

module attributes {stable_mosaic.version = 11 : i64} {
  func.func @_mha_kernel(%arg0: i32, %arg1: memref<1x2x8x16xbf16, #tpu.memory_space<vmem>>, %arg2: memref<1x2x8x16xbf16, #tpu.memory_space<vmem>>, %arg3: memref<1x2x8x16xbf16, #tpu.memory_space<vmem>>, %arg4: memref<1x8x8xf32, #tpu.memory_space<vmem>>, %arg5: memref<1x2x8x16xbf16, #tpu.memory_space<vmem>>) attributes {dimension_semantics = [#tpu.dimension_semantics<parallel>], iteration_bounds = array<i64: 2>, scalar_prefetch = 0 : i64, scratch_operands = 0 : i64, tpu.core_type = #tpu.core_type<tc>, window_params = [{transform_indices = @transform_0, window_bounds = array<i64: 1, 2, 8, 16>}, {transform_indices = @transform_1, window_bounds = array<i64: 1, 2, 8, 16>}, {transform_indices = @transform_2, window_bounds = array<i64: 1, 2, 8, 16>}, {transform_indices = @transform_3, window_bounds = array<i64: 1, 8, 8>}, {transform_indices = @transform_4, window_bounds = array<i64: 1, 2, 8, 16>}]} {
    %c0 = arith.constant 0 : index
    %c0_0 = arith.constant 0 : index
    %c0_1 = arith.constant 0 : index
    %c0_2 = arith.constant 0 : index
    %0 = vector.load %arg1[%c0, %c0_0, %c0_1, %c0_2] : memref<1x2x8x16xbf16, #tpu.memory_space<vmem>>, vector<1x2x8x16xbf16>
    %1 = vector.shape_cast %0 : vector<1x2x8x16xbf16> to vector<2x8x16xbf16>
    %c0_3 = arith.constant 0 : index
    %c0_4 = arith.constant 0 : index
    %c0_5 = arith.constant 0 : index
    %c0_6 = arith.constant 0 : index
    %2 = vector.load %arg2[%c0_3, %c0_4, %c0_5, %c0_6] : memref<1x2x8x16xbf16, #tpu.memory_space<vmem>>, vector<1x2x8x16xbf16>
    %3 = vector.shape_cast %2 : vector<1x2x8x16xbf16> to vector<2x8x16xbf16>
    %c0_7 = arith.constant 0 : index
    %c0_8 = arith.constant 0 : index
    %c0_9 = arith.constant 0 : index
    %c0_10 = arith.constant 0 : index
    %4 = vector.load %arg3[%c0_7, %c0_8, %c0_9, %c0_10] : memref<1x2x8x16xbf16, #tpu.memory_space<vmem>>, vector<1x2x8x16xbf16>
    %5 = vector.shape_cast %4 : vector<1x2x8x16xbf16> to vector<2x8x16xbf16>
    %c0_11 = arith.constant 0 : index
    %c0_12 = arith.constant 0 : index
    %c0_13 = arith.constant 0 : index
    %6 = vector.load %arg4[%c0_11, %c0_12, %c0_13] : memref<1x8x8xf32, #tpu.memory_space<vmem>>, vector<1x8x8xf32>
    %7 = vector.shape_cast %6 : vector<1x8x8xf32> to vector<8x8xf32>
    "tpu.trace_start"() <{level = 10 : i32, message = "hqd,hkd->hqk"}> : () -> ()
    %cst = arith.constant dense<0.000000e+00> : vector<2x8x8xf32>
    %8 = tpu.matmul %1, %3, %cst {dimension_numbers = #tpu.dot_dimension_numbers<[2], [2], [1], [1], [0, 0, 0, 1, 1, 1], [0], [0]>} : vector<2x8x16xbf16>, vector<2x8x16xbf16>, vector<2x8x8xf32> -> vector<2x8x8xf32>
    "tpu.trace_stop"() : () -> ()
    %cst_14 = arith.constant 0.176776692 : f32
    %9 = vector.broadcast %cst_14 : f32 to vector<2x8x8xf32>
    %10 = arith.mulf %8, %9 : vector<2x8x8xf32>
    %cst_15 = arith.constant dense<0xFF800000> : vector<2x8xf32>
    %11 = vector.multi_reduction <maximumf>, %10, %cst_15 [2] : vector<2x8x8xf32> to vector<2x8xf32>
    %12 = vector.shape_cast %11 : vector<2x8xf32> to vector<2x8x1xf32>
    %13 = vector.broadcast %12 : vector<2x8x1xf32> to vector<2x8x8xf32>
    %14 = arith.subf %10, %13 : vector<2x8x8xf32>
    %15 = math.exp %14 : vector<2x8x8xf32>
    %cst_16 = arith.constant dense<0.000000e+00> : vector<2x8xf32>
    %16 = vector.multi_reduction <add>, %15, %cst_16 [2] : vector<2x8x8xf32> to vector<2x8xf32>
    %17 = vector.shape_cast %16 : vector<2x8xf32> to vector<2x8x1xf32>
    %18 = tpu.reciprocal %17 {approx = true} : vector<2x8x1xf32> -> vector<2x8x1xf32>
    %19 = vector.broadcast %18 : vector<2x8x1xf32> to vector<2x8x8xf32>
    %20 = arith.mulf %15, %19 : vector<2x8x8xf32>
    %21 = vector.shape_cast %7 : vector<8x8xf32> to vector<1x8x8xf32>
    %cst_17 = arith.constant 0.000000e+00 : f32
    %22 = vector.broadcast %cst_17 : f32 to vector<1x8x8xf32>
    %23 = arith.cmpf oeq, %21, %22 : vector<1x8x8xf32>
    %cst_18 = arith.constant 9.99999971E-10 : f32
    %24 = vector.shape_cast %23 : vector<1x8x8xi1> to vector<1x8x8xi1>
    %25 = vector.broadcast %24 : vector<1x8x8xi1> to vector<2x8x8xi1>
    %26 = vector.broadcast %cst_18 : f32 to vector<2x8x8xf32>
    %27 = arith.select %25, %26, %20 : vector<2x8x8xi1>, vector<2x8x8xf32>
    %28 = arith.truncf %27 : vector<2x8x8xf32> to vector<2x8x8xbf16>
    "tpu.trace_start"() <{level = 10 : i32, message = "hqk,hkd->hqd"}> : () -> ()
    %cst_19 = arith.constant dense<0.000000e+00> : vector<2x8x16xf32>
    %29 = tpu.matmul %28, %5, %cst_19 {dimension_numbers = #tpu.dot_dimension_numbers<[2], [1], [1], [2], [0, 0, 0, 1, 1, 2], [0], [0]>} : vector<2x8x8xbf16>, vector<2x8x16xbf16>, vector<2x8x16xf32> -> vector<2x8x16xf32>
    "tpu.trace_stop"() : () -> ()
    %30 = arith.truncf %29 : vector<2x8x16xf32> to vector<2x8x16xbf16>
    %c0_20 = arith.constant 0 : index
    %c0_21 = arith.constant 0 : index
    %c0_22 = arith.constant 0 : index
    %c0_23 = arith.constant 0 : index
    %31 = vector.load %arg5[%c0_20, %c0_21, %c0_22, %c0_23] : memref<1x2x8x16xbf16, #tpu.memory_space<vmem>>, vector<1x2x8x16xbf16>
    %32 = vector.shape_cast %31 : vector<1x2x8x16xbf16> to vector<2x8x16xbf16>
    %33 = vector.shape_cast %30 : vector<2x8x16xbf16> to vector<1x2x8x16xbf16>
    tpu.vector_store %arg5[%c0_20, %c0_21, %c0_22, %c0_23], %33 {strides = array<i32>} : memref<1x2x8x16xbf16, #tpu.memory_space<vmem>>, vector<1x2x8x16xbf16>,
    return
  }
  func.func @transform_0(%arg0: i32) -> (i32, i32, i32, i32) {
    %c0_i32 = arith.constant 0 : i32
    %c0_i32_0 = arith.constant 0 : i32
    %c0_i32_1 = arith.constant 0 : i32
    %c0_i32_2 = arith.constant 0 : i32
    return %arg0, %c0_i32, %c0_i32_0, %c0_i32_1 : i32, i32, i32, i32
  }
  func.func @transform_1(%arg0: i32) -> (i32, i32, i32, i32) {
    %c0_i32 = arith.constant 0 : i32
    %c0_i32_0 = arith.constant 0 : i32
    %c0_i32_1 = arith.constant 0 : i32
    %c0_i32_2 = arith.constant 0 : i32
    return %arg0, %c0_i32, %c0_i32_0, %c0_i32_1 : i32, i32, i32, i32
  }
  func.func @transform_2(%arg0: i32) -> (i32, i32, i32, i32) {
    %c0_i32 = arith.constant 0 : i32
    %c0_i32_0 = arith.constant 0 : i32
    %c0_i32_1 = arith.constant 0 : i32
    %c0_i32_2 = arith.constant 0 : i32
    return %arg0, %c0_i32, %c0_i32_0, %c0_i32_1 : i32, i32, i32, i32
  }
  func.func @transform_3(%arg0: i32) -> (i32, i32, i32) {
    %c0_i32 = arith.constant 0 : i32
    %c0_i32_0 = arith.constant 0 : i32
    %c0_i32_1 = arith.constant 0 : i32
    return %arg0, %c0_i32, %c0_i32_0 : i32, i32, i32
  }
  func.func @transform_4(%arg0: i32) -> (i32, i32, i32, i32) {
    %c0_i32 = arith.constant 0 : i32
    %c0_i32_0 = arith.constant 0 : i32
    %c0_i32_1 = arith.constant 0 : i32
    %c0_i32_2 = arith.constant 0 : i32
    return %arg0, %c0_i32, %c0_i32_0, %c0_i32_1 : i32, i32, i32, i32
  }
}

module attributes {stable_mosaic.version = 11 : i64} {
  func.func @_add_ln_kernel(%arg0: i32, %arg1: memref<16x32xbf16, #tpu.memory_space<vmem>>, %arg2: memref<16x32xf32, #tpu.memory_space<vmem>>, %arg3: memref<1x32xf32, #tpu.memory_space<vmem>>, %arg4: memref<1x32xf32, #tpu.memory_space<vmem>>, %arg5: memref<16x32xf32, #tpu.memory_space<vmem>>) attributes {dimension_semantics = [#tpu.dimension_semantics<parallel>], iteration_bounds = array<i64: 1>, scalar_prefetch = 0 : i64, scratch_operands = 0 : i64, tpu.core_type = #tpu.core_type<tc>, window_params = [{transform_indices = @transform_0, window_bounds = array<i64: 16, 32>}, {transform_indices = @transform_1, window_bounds = array<i64: 16, 32>}, {pipeline_mode = #tpu.pipeline_mode<synchronous>, transform_indices = @transform_2, window_bounds = array<i64: 1, 32>}, {pipeline_mode = #tpu.pipeline_mode<synchronous>, transform_indices = @transform_3, window_bounds = array<i64: 1, 32>}, {transform_indices = @transform_4, window_bounds = array<i64: 16, 32>}]} {
    %c0 = arith.constant 0 : index
    %c0_0 = arith.constant 0 : index
    %0 = vector.load %arg1[%c0, %c0_0] : memref<16x32xbf16, #tpu.memory_space<vmem>>, vector<16x32xbf16>
    %1 = arith.extf %0 : vector<16x32xbf16> to vector<16x32xf32>
    %c0_1 = arith.constant 0 : index
    %c0_2 = arith.constant 0 : index
    %2 = vector.load %arg2[%c0_1, %c0_2] : memref<16x32xf32, #tpu.memory_space<vmem>>, vector<16x32xf32>
    %3 = arith.addf %1, %2 : vector<16x32xf32>
    %cst = arith.constant dense<0.000000e+00> : vector<16xf32>
    %4 = vector.multi_reduction <add>, %3, %cst [1] : vector<16x32xf32> to vector<16xf32>
    %5 = vector.shape_cast %4 : vector<16xf32> to vector<16x1xf32>
    %cst_3 = arith.constant 3.200000e+01 : f32
    %6 = vector.broadcast %cst_3 : f32 to vector<16x1xf32>
    %7 = arith.divf %5, %6 : vector<16x1xf32>
    %8 = vector.broadcast %7 : vector<16x1xf32> to vector<16x32xf32>
    %9 = arith.subf %3, %8 : vector<16x32xf32>
    %10 = arith.mulf %9, %9 : vector<16x32xf32>
    %cst_4 = arith.constant dense<0.000000e+00> : vector<16xf32>
    %11 = vector.multi_reduction <add>, %10, %cst_4 [1] : vector<16x32xf32> to vector<16xf32>
    %12 = vector.shape_cast %11 : vector<16xf32> to vector<16x1xf32>
    %cst_5 = arith.constant 3.200000e+01 : f32
    %13 = vector.broadcast %cst_5 : f32 to vector<16x1xf32>
    %14 = arith.divf %12, %13 : vector<16x1xf32>
    %cst_6 = arith.constant 9.99999974E-6 : f32
    %15 = vector.broadcast %cst_6 : f32 to vector<16x1xf32>
    %16 = arith.addf %14, %15 : vector<16x1xf32>
    %17 = math.rsqrt %16 : vector<16x1xf32>
    %18 = vector.broadcast %17 : vector<16x1xf32> to vector<16x32xf32>
    %19 = arith.mulf %9, %18 : vector<16x32xf32>
    %c0_7 = arith.constant 0 : index
    %c0_8 = arith.constant 0 : index
    %20 = vector.load %arg3[%c0_7, %c0_8] : memref<1x32xf32, #tpu.memory_space<vmem>>, vector<1x32xf32>
    %21 = vector.broadcast %20 : vector<1x32xf32> to vector<16x32xf32>
    %22 = arith.mulf %19, %21 : vector<16x32xf32>
    %c0_9 = arith.constant 0 : index
    %c0_10 = arith.constant 0 : index
    %23 = vector.load %arg4[%c0_9, %c0_10] : memref<1x32xf32, #tpu.memory_space<vmem>>, vector<1x32xf32>
    %24 = vector.broadcast %23 : vector<1x32xf32> to vector<16x32xf32>
    %25 = arith.addf %22, %24 : vector<16x32xf32>
    %c0_11 = arith.constant 0 : index
    %c0_12 = arith.constant 0 : index
    %26 = vector.load %arg5[%c0_11, %c0_12] : memref<16x32xf32, #tpu.memory_space<vmem>>, vector<16x32xf32>
    tpu.vector_store %arg5[%c0_11, %c0_12], %25 {strides = array<i32>} : memref<16x32xf32, #tpu.memory_space<vmem>>, vector<16x32xf32>,
    return
  }
  func.func @transform_0(%arg0: i32) -> (i32, i32) {
    %c0_i32 = arith.constant 0 : i32
    %c0_i32_0 = arith.constant 0 : i32
    return %arg0, %c0_i32 : i32, i32
  }
  func.func @transform_1(%arg0: i32) -> (i32, i32) {
    %c0_i32 = arith.constant 0 : i32
    %c0_i32_0 = arith.constant 0 : i32
    return %arg0, %c0_i32 : i32, i32
  }
  func.func @transform_2(%arg0: i32) -> (i32, i32) {
    %c0_i32 = arith.constant 0 : i32
    %c0_i32_0 = arith.constant 0 : i32
    %c0_i32_1 = arith.constant 0 : i32
    return %c0_i32, %c0_i32_0 : i32, i32
  }
  func.func @transform_3(%arg0: i32) -> (i32, i32) {
    %c0_i32 = arith.constant 0 : i32
    %c0_i32_0 = arith.constant 0 : i32
    %c0_i32_1 = arith.constant 0 : i32
    return %c0_i32, %c0_i32_0 : i32, i32
  }
  func.func @transform_4(%arg0: i32) -> (i32, i32) {
    %c0_i32 = arith.constant 0 : i32
    %c0_i32_0 = arith.constant 0 : i32
    return %arg0, %c0_i32 : i32, i32
  }
}

module attributes {stable_mosaic.version = 11 : i64} {
  func.func @_ffn_kernel(%arg0: i32, %arg1: memref<16x32xf32, #tpu.memory_space<vmem>>, %arg2: memref<32x64xbf16, #tpu.memory_space<vmem>>, %arg3: memref<1x64xf32, #tpu.memory_space<vmem>>, %arg4: memref<64x32xbf16, #tpu.memory_space<vmem>>, %arg5: memref<1x32xf32, #tpu.memory_space<vmem>>, %arg6: memref<16x32xf32, #tpu.memory_space<vmem>>) attributes {dimension_semantics = [#tpu.dimension_semantics<parallel>], iteration_bounds = array<i64: 1>, scalar_prefetch = 0 : i64, scratch_operands = 0 : i64, tpu.core_type = #tpu.core_type<tc>, window_params = [{transform_indices = @transform_0, window_bounds = array<i64: 16, 32>}, {pipeline_mode = #tpu.pipeline_mode<synchronous>, transform_indices = @transform_1, window_bounds = array<i64: 32, 64>}, {pipeline_mode = #tpu.pipeline_mode<synchronous>, transform_indices = @transform_2, window_bounds = array<i64: 1, 64>}, {pipeline_mode = #tpu.pipeline_mode<synchronous>, transform_indices = @transform_3, window_bounds = array<i64: 64, 32>}, {pipeline_mode = #tpu.pipeline_mode<synchronous>, transform_indices = @transform_4, window_bounds = array<i64: 1, 32>}, {transform_indices = @transform_5, window_bounds = array<i64: 16, 32>}]} {
    %c0 = arith.constant 0 : index
    %c0_0 = arith.constant 0 : index
    %0 = vector.load %arg1[%c0, %c0_0] : memref<16x32xf32, #tpu.memory_space<vmem>>, vector<16x32xf32>
    %1 = arith.truncf %0 : vector<16x32xf32> to vector<16x32xbf16>
    %c0_1 = arith.constant 0 : index
    %c0_2 = arith.constant 0 : index
    %2 = vector.load %arg2[%c0_1, %c0_2] : memref<32x64xbf16, #tpu.memory_space<vmem>>, vector<32x64xbf16>
    %cst = arith.constant dense<0.000000e+00> : vector<16x64xf32>
    %3 = tpu.matmul %1, %2, %cst {dimension_numbers = #tpu.dot_dimension_numbers<[1], [0], [0], [1], [0, 0, 1, 1], [], []>} : vector<16x32xbf16>, vector<32x64xbf16>, vector<16x64xf32> -> vector<16x64xf32>
    %c0_3 = arith.constant 0 : index
    %c0_4 = arith.constant 0 : index
    %4 = vector.load %arg3[%c0_3, %c0_4] : memref<1x64xf32, #tpu.memory_space<vmem>>, vector<1x64xf32>
    %5 = vector.broadcast %4 : vector<1x64xf32> to vector<16x64xf32>
    %6 = arith.addf %3, %5 : vector<16x64xf32>
    %cst_5 = arith.constant 0.000000e+00 : f32
    %7 = vector.broadcast %cst_5 : f32 to vector<16x64xf32>
    %8 = arith.maximumf %6, %7 : vector<16x64xf32>
    %9 = arith.truncf %8 : vector<16x64xf32> to vector<16x64xbf16>
    %c0_6 = arith.constant 0 : index
    %c0_7 = arith.constant 0 : index
    %10 = vector.load %arg4[%c0_6, %c0_7] : memref<64x32xbf16, #tpu.memory_space<vmem>>, vector<64x32xbf16>
    %cst_8 = arith.constant dense<0.000000e+00> : vector<16x32xf32>
    %11 = tpu.matmul %9, %10, %cst_8 {dimension_numbers = #tpu.dot_dimension_numbers<[1], [0], [0], [1], [0, 0, 1, 1], [], []>} : vector<16x64xbf16>, vector<64x32xbf16>, vector<16x32xf32> -> vector<16x32xf32>
    %c0_9 = arith.constant 0 : index
    %c0_10 = arith.constant 0 : index
    %12 = vector.load %arg5[%c0_9, %c0_10] : memref<1x32xf32, #tpu.memory_space<vmem>>, vector<1x32xf32>
    %13 = vector.broadcast %12 : vector<1x32xf32> to vector<16x32xf32>
    %14 = arith.addf %11, %13 : vector<16x32xf32>
    %15 = arith.addf %14, %0 : vector<16x32xf32>
    %c0_11 = arith.constant 0 : index
    %c0_12 = arith.constant 0 : index
    %16 = vector.load %arg6[%c0_11, %c0_12] : memref<16x32xf32, #tpu.memory_space<vmem>>, vector<16x32xf32>
    tpu.vector_store %arg6[%c0_11, %c0_12], %15 {strides = array<i32>} : memref<16x32xf32, #tpu.memory_space<vmem>>, vector<16x32xf32>,
    return
  }
  func.func @transform_0(%arg0: i32) -> (i32, i32) {
    %c0_i32 = arith.constant 0 : i32
    %c0_i32_0 = arith.constant 0 : i32
    return %arg0, %c0_i32 : i32, i32
  }
  func.func @transform_1(%arg0: i32) -> (i32, i32) {
    %c0_i32 = arith.constant 0 : i32
    %c0_i32_0 = arith.constant 0 : i32
    %c0_i32_1 = arith.constant 0 : i32
    return %c0_i32, %c0_i32_0 : i32, i32
  }
  func.func @transform_2(%arg0: i32) -> (i32, i32) {
    %c0_i32 = arith.constant 0 : i32
    %c0_i32_0 = arith.constant 0 : i32
    %c0_i32_1 = arith.constant 0 : i32
    return %c0_i32, %c0_i32_0 : i32, i32
  }
  func.func @transform_3(%arg0: i32) -> (i32, i32) {
    %c0_i32 = arith.constant 0 : i32
    %c0_i32_0 = arith.constant 0 : i32
    %c0_i32_1 = arith.constant 0 : i32
    return %c0_i32, %c0_i32_0 : i32, i32
  }
  func.func @transform_4(%arg0: i32) -> (i32, i32) {
    %c0_i32 = arith.constant 0 : i32
    %c0_i32_0 = arith.constant 0 : i32
    %c0_i32_1 = arith.constant 0 : i32
    return %c0_i32, %c0_i32_0 : i32, i32
  }
  func.func @transform_5(%arg0: i32) -> (i32, i32) {
    %c0_i32 = arith.constant 0 : i32
    %c0_i32_0 = arith.constant 0 : i32
    return %arg0, %c0_i32 : i32, i32
  }
}

module attributes {stable_mosaic.version = 11 : i64} {
  func.func @_matmul_kernel(%arg0: i32, %arg1: i32, %arg2: i32, %arg3: memref<16x128xbf16, #tpu.memory_space<vmem>>, %arg4: memref<128x128xbf16, #tpu.memory_space<vmem>>, %arg5: memref<1x128xf32, #tpu.memory_space<vmem>>, %arg6: memref<16x128xf32, #tpu.memory_space<vmem>>, %arg7: memref<16x128xf32, #tpu.memory_space<vmem>>) attributes {dimension_semantics = [#tpu.dimension_semantics<parallel>, #tpu.dimension_semantics<parallel>, #tpu.dimension_semantics<arbitrary>], iteration_bounds = array<i64: 1, 1, 1>, scalar_prefetch = 0 : i64, scratch_operands = 1 : i64, tpu.core_type = #tpu.core_type<tc>, window_params = [{transform_indices = @transform_0, window_bounds = array<i64: 16, 128>}, {transform_indices = @transform_1, window_bounds = array<i64: 128, 128>}, {transform_indices = @transform_2, window_bounds = array<i64: 1, 128>}, {transform_indices = @transform_3, window_bounds = array<i64: 16, 128>}]} {
    %c0_i32 = arith.constant 0 : i32
    %0 = arith.cmpi eq, %arg2, %c0_i32 : i32
    %1 = arith.extui %0 : i1 to i32
    %c0_i32_0 = arith.constant 0 : i32
    %2 = arith.cmpi ne, %1, %c0_i32_0 : i32
    scf.if %2 {
      %cst_10 = arith.constant 0.000000e+00 : f32
      %12 = vector.broadcast %cst_10 : f32 to vector<16x128xf32>
      %c0_11 = arith.constant 0 : index
      %c0_12 = arith.constant 0 : index
      %13 = vector.load %arg7[%c0_11, %c0_12] : memref<16x128xf32, #tpu.memory_space<vmem>>, vector<16x128xf32>
      tpu.vector_store %arg7[%c0_11, %c0_12], %12 {strides = array<i32>} : memref<16x128xf32, #tpu.memory_space<vmem>>, vector<16x128xf32>,
    } else {
    }
    %c0 = arith.constant 0 : index
    %c0_1 = arith.constant 0 : index
    %3 = vector.load %arg7[%c0, %c0_1] : memref<16x128xf32, #tpu.memory_space<vmem>>, vector<16x128xf32>
    %c0_2 = arith.constant 0 : index
    %c0_3 = arith.constant 0 : index
    %4 = vector.load %arg3[%c0_2, %c0_3] : memref<16x128xbf16, #tpu.memory_space<vmem>>, vector<16x128xbf16>
    %c0_4 = arith.constant 0 : index
    %c0_5 = arith.constant 0 : index
    %5 = vector.load %arg4[%c0_4, %c0_5] : memref<128x128xbf16, #tpu.memory_space<vmem>>, vector<128x128xbf16>
    %cst = arith.constant dense<0.000000e+00> : vector<16x128xf32>
    %6 = tpu.matmul %4, %5, %cst {dimension_numbers = #tpu.dot_dimension_numbers<[1], [0], [0], [1], [0, 0, 1, 1], [], []>} : vector<16x128xbf16>, vector<128x128xbf16>, vector<16x128xf32> -> vector<16x128xf32>
    %7 = arith.addf %3, %6 : vector<16x128xf32>
    %c0_6 = arith.constant 0 : index
    %c0_7 = arith.constant 0 : index
    %8 = vector.load %arg7[%c0_6, %c0_7] : memref<16x128xf32, #tpu.memory_space<vmem>>, vector<16x128xf32>
    tpu.vector_store %arg7[%c0_6, %c0_7], %7 {strides = array<i32>} : memref<16x128xf32, #tpu.memory_space<vmem>>, vector<16x128xf32>,
    %c0_i32_8 = arith.constant 0 : i32
    %9 = arith.cmpi eq, %arg2, %c0_i32_8 : i32
    %10 = arith.extui %9 : i1 to i32
    %c0_i32_9 = arith.constant 0 : i32
    %11 = arith.cmpi ne, %10, %c0_i32_9 : i32
    scf.if %11 {
      %c0_10 = arith.constant 0 : index
      %c0_11 = arith.constant 0 : index
      %12 = vector.load %arg7[%c0_10, %c0_11] : memref<16x128xf32, #tpu.memory_space<vmem>>, vector<16x128xf32>
      %c0_12 = arith.constant 0 : index
      %c0_13 = arith.constant 0 : index
      %13 = vector.load %arg5[%c0_12, %c0_13] : memref<1x128xf32, #tpu.memory_space<vmem>>, vector<1x128xf32>
      %14 = vector.broadcast %13 : vector<1x128xf32> to vector<16x128xf32>
      %15 = arith.addf %12, %14 : vector<16x128xf32>
      %c0_14 = arith.constant 0 : index
      %c0_15 = arith.constant 0 : index
      %16 = vector.load %arg6[%c0_14, %c0_15] : memref<16x128xf32, #tpu.memory_space<vmem>>, vector<16x128xf32>
      tpu.vector_store %arg6[%c0_14, %c0_15], %15 {strides = array<i32>} : memref<16x128xf32, #tpu.memory_space<vmem>>, vector<16x128xf32>,
    } else {
    }
    return
  }
  func.func @transform_0(%arg0: i32, %arg1: i32, %arg2: i32) -> (i32, i32) {
    %c0_i32 = arith.constant 0 : i32
    return %arg0, %arg2 : i32, i32
  }
  func.func @transform_1(%arg0: i32, %arg1: i32, %arg2: i32) -> (i32, i32) {
    %c0_i32 = arith.constant 0 : i32
    return %arg2, %arg1 : i32, i32
  }
  func.func @transform_2(%arg0: i32, %arg1: i32, %arg2: i32) -> (i32, i32) {
    %c0_i32 = arith.constant 0 : i32
    %c0_i32_0 = arith.constant 0 : i32
    return %c0_i32, %arg1 : i32, i32
  }
  func.func @transform_3(%arg0: i32, %arg1: i32, %arg2: i32) -> (i32, i32) {
    %c0_i32 = arith.constant 0 : i32
    return %arg0, %arg1 : i32, i32
  }
}

</mosaic_0001>

<bundles_post_ra>
// kernel: transformer_forward.25
= control target key start
LH: loop header
LB: loop body
LE: loop exit
PB: predicated region body
PF: predicated region fallthrough
CT: control target
= control target key end

     0   :  { %v227_v0 = vmov 0.0   ;;  %vm228_vm0 = vmmov 0   ;;  %s282_s1 = inlined_call_operand.vmem [shape: bf16[128,128], index: 1, kind: input, shape index: {}]   ;;  %s283_s0 = inlined_call_operand.vmem [shape: bf16[16,128], index: 0, kind: input, shape index: {}]   ;;  %s284_s2 = inlined_call_operand.vmem [shape: f32[1,128], index: 2, kind: input, shape index: {}]   ;;  %s285_s3 = inlined_call_operand.vmem [shape: bf16[16,128], index: 3, kind: output, shape index: {}]  }
   0x1   :  { %196 = vmatprep.subr.bf16.mxu0 %v227_v0  ;;  %v218_v1 = vld [vmem:[%s282_s1 + $0x38] sm:$0xff]   ;;  %212 = vmatprep.mubr.msk.bf16.mxu0 %vm228_vm0, %v227_v0  ;;  %v219_v2 = vld [vmem:[%s282_s1 + $0x30] sm:$0xff]   ;;  %v220_v3 = vld [vmem:[%s282_s1 + $0x28] sm:$0xff]  }
   0x2   :  { %197 = vmatpush3.bf16.msra.mxu0 %v218_v1  ;;  %v221_v4 = vld [vmem:[%s282_s1 + $0x20] sm:$0xff]   ;;  %v222_v5 = vld [vmem:[%s282_s1 + $0x18] sm:$0xff]   ;;  %v223_v6 = vld [vmem:[%s282_s1 + $0x10] sm:$0xff]  }
   0x3   :  { %198 = vmatprep.subr.bf16.mxu0 %v227_v0  ;;  %v224_v7 = vld [vmem:[%s282_s1 + $0x8] sm:$0xff]   ;;  %v225_v8 = vld [vmem:[%s282_s1] sm:$0xff]  }
   0x4   :  { %v226_v9 = vld [vmem:[%s283_s0] sm:$0xff]  }
   0x5   :  { %v177_v11 = vld [vmem:[%s284_s2] ss:$0 sm:$0xff] }
   0x6   :  { %199 = vmatpush3.bf16.msra.mxu0 %v219_v2 }
   0x7   :  { %200 = vmatprep.subr.bf16.mxu0 %v227_v0 }
   0xa   :  { %201 = vmatpush3.bf16.msra.mxu0 %v220_v3 }
   0xb   :  { %202 = vmatprep.subr.bf16.mxu0 %v227_v0 }
   0xe   :  { %203 = vmatpush3.bf16.msra.mxu0 %v221_v4 }
   0xf   :  { %204 = vmatprep.subr.bf16.mxu0 %v227_v0 }
  0x12   :  { %205 = vmatpush3.bf16.msra.mxu0 %v222_v5 }
  0x13   :  { %206 = vmatprep.subr.bf16.mxu0 %v227_v0 }
  0x16   :  { %207 = vmatpush3.bf16.msra.mxu0 %v223_v6 }
  0x17   :  { %208 = vmatprep.subr.bf16.mxu0 %v227_v0 }
  0x1a   :  { %209 = vmatpush3.bf16.msra.mxu0 %v224_v7 }
  0x1b   :  { %210 = vmatprep.subr.bf16.mxu0 %v227_v0 }
  0x1e   :  { %211 = vmatpush3.bf16.msra.mxu0 %v225_v8 }
  0x21   :  { %213 = vmatmul.mubr.bf16.vlgmr.msra.gmra.mxu0 %v226_v9 }
  0xe1   :  { %v129_v10 = vpop.f32.mrf.mxu0 }
  0xe2   :  { %v152_v14 = vadd.f32 %v177_v11, %v129_v10 }
  0xe3   :  { %v214_v12 = vpop.f32.mrf.mxu0 }
  0xe5   :  { %v132_v13 = vpop.f32.mrf.mxu0 }
  0xe6   :  { %v153_v15 = vadd.f32 %v177_v11, %v132_v13 }
  0xe7   :  { %v215_v16 = vpop.f32.mrf.mxu0 }
  0xe8   :  { %v185_v17 = vpack.c.bf16 %v153_v15, %v152_v14 }
  0xea   :  { %186 = vst [vmem:[%s285_s3] sm:$0xff] %v185_v17  }

// kernel: transformer_forward.26
= control target key start
LH: loop header
LB: loop body
LE: loop exit
PB: predicated region body
PF: predicated region fallthrough
CT: control target
= control target key end

     0   :  { %s686_s15 = smov 0   ;;  %s729_s0 = inlined_call_operand.vmem [shape: bf16[2,2,8,16], index: 0, kind: input, shape index: {}]   ;;  %s730_s1 = inlined_call_operand.vmem [shape: bf16[2,2,8,16], index: 1, kind: input, shape index: {}]   ;;  %s731_s2 = inlined_call_operand.vmem [shape: bf16[2,2,8,16], index: 2, kind: input, shape index: {}]   ;;  %s732_s3 = inlined_call_operand.vmem [shape: f32[2,8,8], index: 3, kind: input, shape index: {}]   ;;  %s733_s4 = inlined_call_operand.vmem [shape: bf16[2,2,8,16], index: 4, kind: output, shape index: {}]  }
   0x1 LB: > { %s577_s16 = sadd.s32 4294967295, %s657_s15   ;;  %p581_p0 = scmp.ge.s32.totalorder %s657_s15, 1  ;;  %s657_s15 = sphi %s686_s15, %s14_s15  }
   0x2   : > { %p191_p1 = scmp.lt.s32.totalorder %s657_s15, 3 }
   0x4   : > { %p192_p2 = pnand %p581_p0, %p191_p1 }
   0x5   : > { %p231_p3 = scmp.lt.s32.totalorder (!%p192_p2), %s577_s16, 1 }
   0x6   : > { %195 = sbr.rel (%p192_p2) target bundleno = 736 (0x2e0), region = 36 }
   0xb   : > { %v659_v0 = vmov 0.0   ;;  %s735_s16 = smov (!%p231_p3, %s577_s16), 1  ;;  %vm660_vm0 = vmmov 0   ;;  %vm263_vm1 = vcmask 130048   ;;  %vm358_vm2 = vcmask 64512  }
   0xc   : > { %609 = vmatprep.subr.bf16.mxu0 %v659_v0  ;;  %615 = vmatprep.subr.bf16.mxu1 %v659_v0  ;;  %s696_s17 = sshll.u32 %s735_s16, 3  ;;  %vm391_vm3 = vcmask 1043456   ;;  %vm483_vm5 = vcmask 125952  }
   0xd   : > { %611 = vmatprep.mubr.msk.bf16.mxu0 %vm660_vm0, %v659_v0  ;;  %617 = vmatprep.mubr.msk.bf16.mxu1 %vm660_vm0, %v659_v0  ;;  %s240_s20 = scalar_lea.vmem %s730_s1, %s696_s17  ;;  %s235_s23 = scalar_lea.vmem %s729_s0, %s696_s17 }
   0xe   : > { %v258_v1 = vld [vmem:[%s240_s20] sm:$0xf]  ;;  %v259_v2 = vld [vmem:[%s240_s20 + $0x4] sm:$0xf]  ;;  %s245_s26 = scalar_lea.vmem %s731_s2, %s696_s17  ;;  %s249_s29 = scalar_lea.vmem %s732_s3, %s696_s17 }
   0xf   : > { %v268_v3 = vsel %vm263_vm1, %v258_v1, 0  ;;  %v314_v4 = vsel %vm263_vm1, %v259_v2, 0  ;;  %v256_v5 = vld [vmem:[%s235_s23] sm:$0xf]  ;;  %v257_v6 = vld [vmem:[%s235_s23 + $0x4] sm:$0xf]  ;;  %s254_s6 = scalar_lea.vmem %s733_s4, %s696_s17 }
  0x10   : > { %610 = vmatpush3.bf16.xpose.msra.mxu0 %v268_v3  ;;  %616 = vmatpush3.bf16.xpose.msra.mxu1 %v314_v4  ;;  %v260_v29 = vld [vmem:[%s245_s26] sm:$0xf]  ;;  %v261_v31 = vld [vmem:[%s245_s26 + $0x4] sm:$0xf] }
  0x11   : > { %621 = vmatprep.subr.bf16.mxu0 %v659_v0  ;;  %627 = vmatprep.subr.bf16.mxu1 %v659_v0  ;;  %v393_v30 = vsel %vm391_vm3, %v260_v29, 0  ;;  %v439_v32 = vsel %vm391_vm3, %v261_v31, 0  ;;  %v262_v35 = vld [vmem:[%s249_s29] sm:$0xff] }
  0x12   : > { %vm381_vm4 = vcmp.eq.f32.partialorder %v262_v35, 0.0 }
  0x17   : > { %612 = vmatmul.mubr.msk.bf16.vlgmr.msra.gmra.mxu0 %vm263_vm1, %v256_v5  ;;  %618 = vmatmul.mubr.msk.bf16.vlgmr.msra.gmra.mxu1 %vm263_vm1, %v257_v6 }
  0x18   : > { %623 = vmatprep.mubr.msk.bf16.mxu0 %vm660_vm0, %v659_v0  ;;  %629 = vmatprep.mubr.msk.bf16.mxu1 %vm660_vm0, %v659_v0 }
  0x19   : > { %622 = vmatpush3.bf16.msra.mxu0 %v393_v30  ;;  %628 = vmatpush3.bf16.msra.mxu1 %v439_v32 }
  0xd7   : > { %v304_v7 = vpop.f32.mrf.mxu0  ;;  %v350_v8 = vpop.f32.mrf.mxu1 }
  0xd8   : > { %v356_v9 = vmul.f32 0.17677669, %v304_v7  ;;  %v357_v10 = vmul.f32 0.17677669, %v350_v8 }
  0xd9   : > { %v613_v11 = vpop.f32.mrf.mxu0  ;;  %v619_v12 = vpop.f32.mrf.mxu1 }
  0xda   : > { %v359_v13 = vsel %vm358_vm2, %v356_v9, -inf  ;;  %v362_v16 = vsel %vm358_vm2, %v357_v10, -inf }
  0xdb   : > { %v353_v14 = vpop.f32.mrf.mxu1  ;;  %360 = vmax.xlane.f32.xlu0 %v359_v13  ;;  %v307_v15 = vpop.f32.mrf.mxu0 }
  0xdd   : > { %v614_v17 = vpop.f32.mrf.mxu0  ;;  %v620_v18 = vpop.f32.mrf.mxu1 }
  0xdf   : > { %363 = vmax.xlane.f32.xlu0 %v362_v16 }
 0x164   : > { %v361_v19 = vpop.xlane.xlu0 %360 }
 0x165   : > { %v365_v20 = vsub.f32 %v356_v9, %v361_v19 }
 0x167   : > { %v367_v21 = vmul.f32 1.442695, %v365_v20 }
 0x168   : > { %v364_v22 = vpop.xlane.xlu0 %363 }
 0x169   : > { %643 = vpow2.f32 %v367_v21  ;;  %v366_v23 = vsub.f32 %v357_v10, %v364_v22 }
 0x16b   : > { %v369_v24 = vmul.f32 1.442695, %v366_v23 }
 0x16d   : > { %645 = vpow2.f32 %v369_v24 }
 0x176   : > { %v644_v25 = vpop.eup %643 }
 0x177   : > { %v371_v26 = vsel %vm358_vm2, %v644_v25, 0.0 }
 0x178   : > { %372 = vadd.xlane.f32.xlu1 %v371_v26 }
 0x17a   : > { %v646_v27 = vpop.eup %645 }
 0x17b   : > { %v374_v28 = vsel %vm358_vm2, %v646_v27, 0.0 }
 0x17c   : > { %375 = vadd.xlane.f32.xlu1 %v374_v28 }
 0x201   : > { %v373_v33 = vpop.xlane.xlu1 %372 }
 0x202   : > { %647 = vrcp.f32 %v373_v33 }
 0x205   : > { %v376_v34 = vpop.xlane.xlu1 %375 }
 0x206   : > { %649 = vrcp.f32 %v376_v34 }
 0x20f   : > { %v648_v36 = vpop.eup %647 }
 0x210   : > { %v379_v37 = vmul.f32 %v648_v36, %v644_v25 }
 0x212   : > { %v384_v38 = vsel %vm381_vm4, 1e-09, %v379_v37 }
 0x213   : > { %v650_v39 = vpop.eup %649  ;;  %v386_v40 = vpack.c.bf16 %v384_v38, %v384_v38 }
 0x214   : > { %v380_v41 = vmul.f32 %v650_v39, %v646_v27 }
 0x215   : > { %624 = vmatmul.mubr.msk.bf16.vlgmr.msra.gmra.mxu0 %vm358_vm2, %v386_v40 }
 0x216   : > { %v385_v42 = vsel %vm381_vm4, 1e-09, %v380_v41 }
 0x217   : > { %v387_v43 = vpack.c.bf16 %v385_v42, %v385_v42 }
 0x219   : > { %630 = vmatmul.mubr.msk.bf16.vlgmr.msra.gmra.mxu1 %vm358_vm2, %v387_v43 }
 0x2d5   : > { %v429_v44 = vpop.f32.mrf.mxu0 }
 0x2d6   : > { %v481_v45 = vpack.c.bf16 %v429_v44, %v429_v44 }
 0x2d7   : > { %v625_v46 = vpop.f32.mrf.mxu0 }
 0x2d8   : > { %484 = vst.msk [vmem:[%s254_s6] sm:$0xf] %vm483_vm5, %v481_v45 }
 0x2d9   : > { %v432_v47 = vpop.f32.mrf.mxu0  ;;  %v475_v48 = vpop.f32.mrf.mxu1 }
 0x2da   : > { %v482_v49 = vpack.c.bf16 %v475_v48, %v475_v48 }
 0x2db   : > { %v626_v50 = vpop.f32.mrf.mxu0  ;;  %v631_v51 = vpop.f32.mrf.mxu1 }
 0x2dc   : > { %485 = vst.msk [vmem:[%s254_s6 + $0x4] sm:$0xf] %vm483_vm5, %v482_v49 }
 0x2dd   : > { %v478_v52 = vpop.f32.mrf.mxu1 }
 0x2df   : > { %v632_v53 = vpop.f32.mrf.mxu1 }
 0x2e0 PF: > { %s14_s15 = sadd.s32 1, %s657_s15  }
 0x2e1   : > { %p11_p4 = scmp.ge.s32.totalorder %s14_s15, 4  }
 0x2e3   :  { %13 = sbr.rel (!%p11_p4) target bundleno = 1 (0x1), region = 75 }

// kernel: transformer_forward.27
= control target key start
LH: loop header
LB: loop body
LE: loop exit
PB: predicated region body
PF: predicated region fallthrough
CT: control target
= control target key end

     0   :  { %vm25_vm0 = vcmask 261120   ;;  %s139_s0 = inlined_call_operand.vmem [shape: bf16[16,32], index: 0, kind: input, shape index: {}]   ;;  %s140_s1 = inlined_call_operand.vmem [shape: f32[16,32], index: 1, kind: input, shape index: {}]   ;;  %s141_s2 = inlined_call_operand.vmem [shape: f32[1,32], index: 2, kind: input, shape index: {}]   ;;  %s142_s3 = inlined_call_operand.vmem [shape: f32[1,32], index: 3, kind: input, shape index: {}]   ;;  %s143_s4 = inlined_call_operand.vmem [shape: f32[16,32], index: 4, kind: output, shape index: {}]  }
   0x1   :  { %v80_v0 = vld [vmem:[%s139_s0] sm:$0xff]   ;;  %v22_v2 = vld [vmem:[%s140_s1 + $0x8] sm:$0xff] }
   0x2   :  { %v21_v1 = vld [vmem:[%s140_s1] sm:$0xff]  ;;  %v81_v3 = vunpack.c.l.bf16 %v80_v0  ;;  %v82_v4 = vunpack.c.h.bf16 %v80_v0 }
   0x3   :  { %v77_v26 = vld [vmem:[%s141_s2] ss:$0 sm:$0xff] }
   0x4   :  { %v23_v5 = vadd.f32 %v81_v3, %v21_v1  ;;  %v24_v6 = vadd.f32 %v82_v4, %v22_v2  ;;  %v78_v28 = vld [vmem:[%s142_s3] ss:$0 sm:$0xff] }
   0x6   :  { %v26_v7 = vsel %vm25_vm0, %v23_v5, 0.0  ;;  %v29_v8 = vsel %vm25_vm0, %v24_v6, 0.0 }
   0x7   :  { %27 = vadd.xlane.f32.xlu0 %v26_v7 }
   0xb   :  { %30 = vadd.xlane.f32.xlu0 %v29_v8 }
  0x90   :  { %v28_v9 = vpop.xlane.xlu0 %27 }
  0x91   :  { %v33_v10 = vmul.f32 0.03125, %v28_v9 }
  0x93   :  { %v35_v11 = vsub.f32 %v23_v5, %v33_v10 }
  0x94   :  { %v31_v12 = vpop.xlane.xlu0 %30 }
  0x95   :  { %v34_v13 = vmul.f32 0.03125, %v31_v12  ;;  %v37_v14 = vmul.f32 %v35_v11, %v35_v11 }
  0x97   :  { %v36_v15 = vsub.f32 %v24_v6, %v34_v13  ;;  %v39_v16 = vsel %vm25_vm0, %v37_v14, 0.0 }
  0x98   :  { %40 = vadd.xlane.f32.xlu1 %v39_v16 }
  0x99   :  { %v38_v17 = vmul.f32 %v36_v15, %v36_v15 }
  0x9b   :  { %v42_v18 = vsel %vm25_vm0, %v38_v17, 0.0 }
  0x9c   :  { %43 = vadd.xlane.f32.xlu1 %v42_v18 }
 0x121   :  { %v41_v19 = vpop.xlane.xlu1 %40 }
 0x122   :  { %v45_v20 = vmul.f32 0.03125, %v41_v19 }
 0x124   :  { %v47_v21 = vadd.f32 1e-05, %v45_v20 }
 0x125   :  { %v44_v22 = vpop.xlane.xlu1 %43 }
 0x126   :  { %83 = vrsqrt.f32 %v47_v21  ;;  %v46_v23 = vmul.f32 0.03125, %v44_v22 }
 0x128   :  { %v48_v24 = vadd.f32 1e-05, %v46_v23 }
 0x12a   :  { %85 = vrsqrt.f32 %v48_v24 }
 0x133   :  { %v84_v25 = vpop.eup %83 }
 0x134   :  { %v51_v27 = vmul.f32 %v84_v25, %v35_v11 }
 0x136   :  { %v60_v29 = vmul.f32 %v77_v26, %v51_v27 }
 0x137   :  { %v86_v30 = vpop.eup %85 }
 0x138   :  { %v69_v31 = vadd.f32 %v78_v28, %v60_v29  ;;  %v52_v32 = vmul.f32 %v86_v30, %v36_v15 }
 0x13a   :  { %71 = vst.msk [vmem:[%s143_s4] sm:$0xff] %vm25_vm0, %v69_v31  ;;  %v61_v33 = vmul.f32 %v77_v26, %v52_v32 }
 0x13c   :  { %v70_v34 = vadd.f32 %v78_v28, %v61_v33 }
 0x13e   :  { %72 = vst.msk [vmem:[%s143_s4 + $0x8] sm:$0xff] %vm25_vm0, %v70_v34 }

// kernel: transformer_forward.28
= control target key start
LH: loop header
LB: loop body
LE: loop exit
PB: predicated region body
PF: predicated region fallthrough
CT: control target
= control target key end

     0   :  { %v233_v0 = vmov 0.0   ;;  %vm234_vm0 = vmmov 0   ;;  %vm47_vm1 = vcmask 261120   ;;  %vm134_vm2 = vcmask 523264   ;;  %s304_s1 = inlined_call_operand.vmem [shape: bf16[32,64], index: 1, kind: input, shape index: {}]   ;;  %s305_s0 = inlined_call_operand.vmem [shape: f32[16,32], index: 0, kind: input, shape index: {}]   ;;  %s306_s3 = inlined_call_operand.vmem [shape: bf16[64,32], index: 3, kind: input, shape index: {}]   ;;  %s307_s2 = inlined_call_operand.vmem [shape: f32[1,64], index: 2, kind: input, shape index: {}]   ;;  %s308_s4 = inlined_call_operand.vmem [shape: f32[1,32], index: 4, kind: input, shape index: {}]   ;;  %s309_s5 = inlined_call_operand.vmem [shape: f32[16,32], index: 5, kind: output, shape index: {}]  }
   0x1   :  { %205 = vmatprep.subr.bf16.mxu0 %v233_v0  ;;  %v227_v1 = vld [vmem:[%s304_s1 + $0x8] sm:$0xff]   ;;  %209 = vmatprep.mubr.msk.bf16.mxu0 %vm234_vm0, %v233_v0  ;;  %v228_v2 = vld [vmem:[%s304_s1] sm:$0xff]   ;;  %v229_v5 = vld [vmem:[%s306_s3 + $0x18] sm:$0xff]  }
   0x2   :  { %213 = vmatprep.subr.bf16.mxu1 %v233_v0  ;;  %221 = vmatprep.mubr.msk.bf16.mxu1 %vm234_vm0, %v233_v0  ;;  %v21_v3 = vld [vmem:[%s305_s0] sm:$0xff]  ;;  %v22_v4 = vld [vmem:[%s305_s0 + $0x8] sm:$0xff]  ;;  %v230_v7 = vld [vmem:[%s306_s3 + $0x10] sm:$0xff]  }
   0x3   :  { %206 = vmatpush3.bf16.msra.mxu0 %v227_v1  ;;  %v23_v6 = vpack.c.bf16 %v22_v4, %v21_v3  ;;  %214 = vmatpush3.bf16.msra.mxu1 %v229_v5  ;;  %v231_v8 = vld [vmem:[%s306_s3 + $0x8] sm:$0xff]   ;;  %v232_v9 = vld [vmem:[%s306_s3] sm:$0xff]  }
   0x4   :  { %207 = vmatprep.subr.bf16.mxu0 %v233_v0  ;;  %215 = vmatprep.subr.bf16.mxu1 %v233_v0  ;;  %v187_v10 = vld [vmem:[%s307_s2] ss:$0 sm:$0xff] }
   0x5   :  { %v191_v20 = vld [vmem:[%s308_s4] ss:$0 sm:$0xff] }
   0x7   :  { %208 = vmatpush3.bf16.msra.mxu0 %v228_v2  ;;  %216 = vmatpush3.bf16.msra.mxu1 %v230_v7 }
   0x8   :  { %217 = vmatprep.subr.bf16.mxu1 %v233_v0 }
   0xa   :  { %210 = vmatmul.mubr.msk.bf16.vlgmr.msra.gmra.mxu0 %vm47_vm1, %v23_v6 }
   0xb   :  { %218 = vmatpush3.bf16.msra.mxu1 %v231_v8 }
   0xc   :  { %219 = vmatprep.subr.bf16.mxu1 %v233_v0 }
   0xf   :  { %220 = vmatpush3.bf16.msra.mxu1 %v232_v9 }
  0xca   :  { %v85_v11 = vpop.f32.mrf.mxu0 }
  0xcb   :  { %v86_v13 = vadd.f32 %v187_v10, %v85_v11 }
  0xcc   :  { %v211_v12 = vpop.f32.mrf.mxu0 }
  0xcd   :  { %v92_v17 = vmax.f32 %v86_v13, 0.0 }
  0xce   :  { %v88_v14 = vpop.f32.mrf.mxu0 }
  0xcf   :  { %v89_v15 = vadd.f32 %v187_v10, %v88_v14 }
  0xd0   :  { %v212_v16 = vpop.f32.mrf.mxu0 }
  0xd1   :  { %v93_v18 = vmax.f32 %v89_v15, 0.0 }
  0xd3   :  { %v94_v19 = vpack.c.bf16 %v93_v18, %v92_v17 }
  0xd5   :  { %222 = vmatmul.mubr.msk.bf16.vlgmr.msra.gmra.mxu1 %vm134_vm2, %v94_v19 }
 0x195   :  { %v172_v21 = vpop.f32.mrf.mxu1 }
 0x196   :  { %v173_v22 = vadd.f32 %v191_v20, %v172_v21 }
 0x197   :  { %v223_v23 = vpop.f32.mrf.mxu1 }
 0x198   :  { %v179_v24 = vadd.f32 %v173_v22, %v21_v3 }
 0x199   :  { %v175_v25 = vpop.f32.mrf.mxu1 }
 0x19a   :  { %181 = vst.msk [vmem:[%s309_s5] sm:$0xff] %vm47_vm1, %v179_v24  ;;  %v176_v26 = vadd.f32 %v191_v20, %v175_v25 }
 0x19b   :  { %v224_v27 = vpop.f32.mrf.mxu1 }
 0x19c   :  { %v180_v28 = vadd.f32 %v176_v26, %v22_v4 }
 0x19e   :  { %182 = vst.msk [vmem:[%s309_s5 + $0x8] sm:$0xff] %vm47_vm1, %v180_v28 }

// kernel: transformer_forward.49
= control target key start
LH: loop header
LB: loop body
LE: loop exit
PB: predicated region body
PF: predicated region fallthrough
CT: control target
= control target key end

     0   :  { %v210_v0 = vmov 0.0   ;;  %vm211_vm0 = vmmov 0   ;;  %s268_s1 = inlined_call_operand.vmem [shape: bf16[128,128], index: 1, kind: input, shape index: {}]   ;;  %s269_s0 = inlined_call_operand.vmem [shape: bf16[16,128], index: 0, kind: input, shape index: {}]   ;;  %s270_s2 = inlined_call_operand.vmem [shape: f32[1,128], index: 2, kind: input, shape index: {}]   ;;  %s271_s3 = inlined_call_operand.vmem [shape: f32[16,128], index: 3, kind: output, shape index: {}]  }
   0x1   :  { %179 = vmatprep.subr.bf16.mxu0 %v210_v0  ;;  %v201_v1 = vld [vmem:[%s268_s1 + $0x38] sm:$0xff]   ;;  %195 = vmatprep.mubr.msk.bf16.mxu0 %vm211_vm0, %v210_v0  ;;  %v202_v2 = vld [vmem:[%s268_s1 + $0x30] sm:$0xff]   ;;  %v203_v3 = vld [vmem:[%s268_s1 + $0x28] sm:$0xff]  }
   0x2   :  { %180 = vmatpush3.bf16.msra.mxu0 %v201_v1  ;;  %v204_v4 = vld [vmem:[%s268_s1 + $0x20] sm:$0xff]   ;;  %v205_v5 = vld [vmem:[%s268_s1 + $0x18] sm:$0xff]   ;;  %v206_v6 = vld [vmem:[%s268_s1 + $0x10] sm:$0xff]  }
   0x3   :  { %181 = vmatprep.subr.bf16.mxu0 %v210_v0  ;;  %v207_v7 = vld [vmem:[%s268_s1 + $0x8] sm:$0xff]   ;;  %v208_v8 = vld [vmem:[%s268_s1] sm:$0xff]  }
   0x4   :  { %v209_v9 = vld [vmem:[%s269_s0] sm:$0xff]  }
   0x5   :  { %v169_v10 = vld [vmem:[%s270_s2] ss:$0 sm:$0xff] }
   0x6   :  { %182 = vmatpush3.bf16.msra.mxu0 %v202_v2 }
   0x7   :  { %183 = vmatprep.subr.bf16.mxu0 %v210_v0 }
   0xa   :  { %184 = vmatpush3.bf16.msra.mxu0 %v203_v3 }
   0xb   :  { %185 = vmatprep.subr.bf16.mxu0 %v210_v0 }
   0xe   :  { %186 = vmatpush3.bf16.msra.mxu0 %v204_v4 }
   0xf   :  { %187 = vmatprep.subr.bf16.mxu0 %v210_v0 }
  0x12   :  { %188 = vmatpush3.bf16.msra.mxu0 %v205_v5 }
  0x13   :  { %189 = vmatprep.subr.bf16.mxu0 %v210_v0 }
  0x16   :  { %190 = vmatpush3.bf16.msra.mxu0 %v206_v6 }
  0x17   :  { %191 = vmatprep.subr.bf16.mxu0 %v210_v0 }
  0x1a   :  { %192 = vmatpush3.bf16.msra.mxu0 %v207_v7 }
  0x1b   :  { %193 = vmatprep.subr.bf16.mxu0 %v210_v0 }
  0x1e   :  { %194 = vmatpush3.bf16.msra.mxu0 %v208_v8 }
  0x21   :  { %196 = vmatmul.mubr.bf16.vlgmr.msra.gmra.mxu0 %v209_v9 }
  0xe1   :  { %v129_v11 = vpop.f32.mrf.mxu0 }
  0xe2   :  { %v152_v12 = vadd.f32 %v169_v10, %v129_v11 }
  0xe3   :  { %v197_v13 = vpop.f32.mrf.mxu0 }
  0xe4   :  { %154 = vst [vmem:[%s271_s3] sm:$0xff] %v152_v12 }
  0xe5   :  { %v132_v14 = vpop.f32.mrf.mxu0 }
  0xe6   :  { %v153_v15 = vadd.f32 %v169_v10, %v132_v14 }
  0xe7   :  { %v198_v16 = vpop.f32.mrf.mxu0 }
  0xe8   :  { %155 = vst [vmem:[%s271_s3 + $0x8] sm:$0xff] %v153_v15 }

</bundles_post_ra>
